<compile_context>
chip_gen: v6e
topology: v6e:2x2x1
jax: 0.10.0
libtpu: 0.0.40
codegen_flags: <defaults>
</compile_context>

<pallas_src>
import copy

import jax
import jax.numpy as jnp
from jax.experimental import pallas as pl
from jax.experimental.pallas import tpu as pltpu


# ----------------------------------------------------------------------------
# Pallas kernels
# ----------------------------------------------------------------------------

def _vspec(shape):
    """Full-array VMEM block for a grid=(1,) call."""
    nd = len(shape)
    return pl.BlockSpec(shape, lambda i, _nd=nd: (0,) * _nd)


def _fused_full_kernel(x_ref, real_ref, ew_ref, eb_ref, gw_ref, gb_ref,
                       dw_ref, db_ref,
                       emb_ref, fake_ref, fs_ref, rs_ref,
                       gadv_ref, dadv_ref, l1_ref):
    """embedder -> generator -> discriminator(fake,real) -> hinge + L1 losses,
    all in one kernel; intermediates never leave VMEM."""
    x = x_ref[...]                       # (B, D) f32
    real = real_ref[...]                 # (B, D) f32

    # --- embedder: relu(x @ Ew + Eb); bf16 weights, f32 MXU accumulation.
    emb = jnp.dot(x.astype(jnp.bfloat16), ew_ref[...],
                  preferred_element_type=jnp.float32) + eb_ref[...]
    emb = jnp.maximum(emb, 0.0)
    emb_ref[...] = emb

    # --- generator: tanh(emb @ Gw + Gb) -> flat fake image (B, D).
    fake = jnp.tanh(jnp.dot(emb.astype(jnp.bfloat16), gw_ref[...],
                            preferred_element_type=jnp.float32) + gb_ref[...])
    fake_ref[...] = fake

    # --- discriminator: N=1 projection as VPU multiply + XLU lane reduce
    #     (avoids a 1-column MXU matmul); fake & real scored together.
    w = dw_ref[...]                      # (1, D) f32
    b = db_ref[...]                      # (1, 1) f32
    fake_score = jnp.sum(fake * w, axis=-1, keepdims=True) + b   # (B, 1)
    real_score = jnp.sum(real * w, axis=-1, keepdims=True) + b   # (B, 1)
    fs_ref[...] = fake_score
    rs_ref[...] = real_score

    # --- hinge adversarial losses.
    bsz = fake_score.shape[0]
    gadv_ref[...] = -jnp.sum(fake_score, axis=0, keepdims=True) / bsz
    d_loss = (jnp.maximum(0.0, 1.0 - real_score)
              + jnp.maximum(0.0, 1.0 + fake_score))
    dadv_ref[...] = jnp.sum(d_loss, axis=0, keepdims=True) / bsz

    # --- L1 reconstruction loss on the already-resident fake/real tiles.
    diff = jnp.abs(fake - real)
    per_row = jnp.sum(diff, axis=-1, keepdims=True)              # (B, 1)
    l1_ref[...] = jnp.sum(per_row, axis=0, keepdims=True) / (
        diff.shape[0] * diff.shape[1])


def _fused_gen_kernel(x_ref, ew_ref, eb_ref, gw_ref, gb_ref,
                      emb_ref, fake_ref):
    """compute_losses=False path: only embedder + generator."""
    x = x_ref[...]
    emb = jnp.maximum(
        jnp.dot(x.astype(jnp.bfloat16), ew_ref[...],
                preferred_element_type=jnp.float32) + eb_ref[...], 0.0)
    emb_ref[...] = emb
    fake_ref[...] = jnp.tanh(
        jnp.dot(emb.astype(jnp.bfloat16), gw_ref[...],
                preferred_element_type=jnp.float32) + gb_ref[...])


def _l1_kernel(fake_ref, real_ref, o_ref):
    # cold-path fallback only (losses are normally fused into the full kernel)
    diff = jnp.abs(fake_ref[...] - real_ref[...])
    o_ref[...] = jnp.sum(jnp.sum(diff, axis=-1, keepdims=True),
                         axis=0, keepdims=True) / (diff.shape[0] * diff.shape[1])


# ----------------------------------------------------------------------------
# Jitted wrappers around the fused kernels
# ----------------------------------------------------------------------------

@jax.jit
def _fused_forward_full(x_flat, real_flat, emb_p, gen_p, disc_p):
    B, D = x_flat.shape
    E = emb_p["w"].shape[1]
    outs = pl.pallas_call(
        _fused_full_kernel,
        out_shape=(
            jax.ShapeDtypeStruct((B, E), jnp.float32),   # embedding
            jax.ShapeDtypeStruct((B, D), jnp.float32),   # fake_flat
            jax.ShapeDtypeStruct((B, 1), jnp.float32),   # fake_score
            jax.ShapeDtypeStruct((B, 1), jnp.float32),   # real_score
            jax.ShapeDtypeStruct((1, 1), jnp.float32),   # adversarial_G
            jax.ShapeDtypeStruct((1, 1), jnp.float32),   # adversarial_D
            jax.ShapeDtypeStruct((1, 1), jnp.float32),   # l1_G
        ),
        grid=(1,),
        in_specs=[_vspec((B, D)), _vspec((B, D)),
                  _vspec(emb_p["w"].shape), _vspec((1, E)),
                  _vspec(gen_p["w"].shape), _vspec((1, D)),
                  _vspec((1, D)), _vspec((1, 1))],
        out_specs=[_vspec((B, E)), _vspec((B, D)),
                   _vspec((B, 1)), _vspec((B, 1)),
                   _vspec((1, 1)), _vspec((1, 1)), _vspec((1, 1))],
        compiler_params=pltpu.CompilerParams(
            dimension_semantics=("arbitrary",)),
    )(x_flat, real_flat,
      emb_p["w"], emb_p["b"].reshape(1, E),
      gen_p["w"], gen_p["b"].reshape(1, D),
      disc_p["w"], disc_p["b"])
    emb, fake_flat, fake_score, real_score, g_adv, d_adv, l1 = outs
    return (emb, fake_flat, fake_score, real_score,
            g_adv[0, 0], d_adv[0, 0], l1[0, 0])


@jax.jit
def _fused_forward_gen(x_flat, emb_p, gen_p):
    B, D = x_flat.shape
    E = emb_p["w"].shape[1]
    return pl.pallas_call(
        _fused_gen_kernel,
        out_shape=(jax.ShapeDtypeStruct((B, E), jnp.float32),
                   jax.ShapeDtypeStruct((B, D), jnp.float32)),
        grid=(1,),
        in_specs=[_vspec((B, D)),
                  _vspec(emb_p["w"].shape), _vspec((1, E)),
                  _vspec(gen_p["w"].shape), _vspec((1, D))],
        out_specs=[_vspec((B, E)), _vspec((B, D))],
        compiler_params=pltpu.CompilerParams(
            dimension_semantics=("arbitrary",)),
    )(x_flat, emb_p["w"], emb_p["b"].reshape(1, E),
      gen_p["w"], gen_p["b"].reshape(1, D))


@jax.jit
def _pallas_l1(fake_flat, real_flat):
    B, D = fake_flat.shape
    out = pl.pallas_call(
        _l1_kernel,
        out_shape=jax.ShapeDtypeStruct((1, 1), jnp.float32),
        grid=(1,),
        in_specs=[_vspec((B, D)), _vspec((B, D))],
        out_specs=_vspec((1, 1)),
    )(fake_flat, real_flat)
    return out[0, 0]


# ----------------------------------------------------------------------------
# Synthetic sub-modules (deterministic init; hot path lives in the fused kernel)
# ----------------------------------------------------------------------------

class Embedder:
    """image (B,C,H,W) -> embedding (B,E).  bf16 weight, f32 bias."""

    def __init__(self, key, in_dim, emb_dim):
        k1, _ = jax.random.split(key)
        self.params = {
            "w": (jax.random.normal(k1, (in_dim, emb_dim), jnp.float32)
                  * 0.02).astype(jnp.bfloat16),
            "b": jnp.zeros((emb_dim,), jnp.float32),
        }


class Generator:
    """embedding (B,E) -> fake_image (B,C,H,W).  bf16 weight, f32 bias."""

    def __init__(self, key, emb_dim, image_shape):
        self.image_shape = image_shape  # (C, H, W)
        out_dim = image_shape[0] * image_shape[1] * image_shape[2]
        k1, _ = jax.random.split(key)
        self.params = {
            "w": (jax.random.normal(k1, (emb_dim, out_dim), jnp.float32)
                  * 0.02).astype(jnp.bfloat16),
            "b": jnp.zeros((out_dim,), jnp.float32),
        }


class Discriminator:
    """flat image (B,D) -> score (B,1); weight stored row-major (1,D) so the
    fused kernel can use a VPU multiply + lane reduce (no N=1 MXU matmul)."""

    def __init__(self, key, in_dim):
        k1, _ = jax.random.split(key)
        self.params = {
            "w": jax.random.normal(k1, (1, in_dim), jnp.float32) * 0.02,
            "b": jnp.zeros((1, 1), jnp.float32),
        }


class AdversarialCriterion:
    """Returns (losses_G_dict, losses_D_dict); values were produced inside the
    fused forward kernel (no extra launch)."""

    def __call__(self, data_dict):
        return ({"adversarial_G": data_dict["_adversarial_G"]},
                {"adversarial_D": data_dict["_adversarial_D"]})


class L1Criterion:
    """Returns a single losses_G dict; value is normally read from the fused
    kernel output; a standalone Pallas kernel is the cold-path fallback."""

    def __call__(self, data_dict):
        if "_l1_G" in data_dict:
            return {"l1_G": data_dict["_l1_G"]}
        fake = data_dict["fake_image"]
        real = data_dict["real_image"]
        B = fake.shape[0]
        return {"l1_G": _pallas_l1(fake.reshape(B, -1).astype(jnp.float32),
                                   real.reshape(B, -1).astype(jnp.float32))}


# ----------------------------------------------------------------------------
# TrainingModule (forward semantics mirrored from the PyTorch module)
# ----------------------------------------------------------------------------

class TrainingModule:
    def __init__(self, embedder, generator, discriminator,
                 criterion_list, metric_list, running_averages={}):
        self.embedder = embedder
        self.generator = generator
        self.discriminator = discriminator
        self.criterion_list = list(criterion_list)
        self.metric_list = list(metric_list)
        self.compute_losses = True
        self.use_running_averages = False
        self.initialize_running_averages(running_averages)

    def initialize_running_averages(self, initial_values={}):
        self.running_averages = {}
        if initial_values is not None:
            for name in ("embedder", "generator"):
                model = getattr(self, name)
                try:
                    init = initial_values[name]
                    self.running_averages[name] = copy.deepcopy(init)
                except (KeyError, TypeError):
                    # clone current weights
                    self.running_averages[name] = jax.tree_util.tree_map(
                        lambda p: p, model.params)

    def update_running_average(self, alpha=0.999):
        # EMA done in f32 then cast back to the parameter dtype (bf16 weights).
        # TODO(synk): PyTorch also copies module buffers; synthetic modules
        # here have no buffers.
        def ema(a, c):
            new = (a.astype(jnp.float32) * alpha
                   + c.astype(jnp.float32) * (1.0 - alpha))
            return new.astype(a.dtype)

        for name, avg_params in self.running_averages.items():
            cur_params = getattr(self, name).params
            self.running_averages[name] = jax.tree_util.tree_map(
                ema, avg_params, cur_params)

    def set_use_running_averages(self, value=True):
        self.use_running_averages = value

    def set_compute_losses(self, value=True):
        self.compute_losses = value

    def forward(self, data_dict, target_dict):
        if self.running_averages and self.use_running_averages:
            emb_params = self.running_averages["embedder"]
            gen_params = self.running_averages["generator"]
        else:
            emb_params = self.embedder.params
            gen_params = self.generator.params

        data_dict = copy.copy(data_dict)
        x = data_dict["image"]
        B = x.shape[0]
        x_flat = x.reshape(B, -1).astype(jnp.float32)

        merged = {**data_dict, **target_dict}
        have_real = "real_image" in merged

        if self.compute_losses and have_real:
            real_flat = merged["real_image"].reshape(B, -1).astype(jnp.float32)
            (emb, fake_flat, fake_score, real_score,
             g_adv, d_adv, l1) = _fused_forward_full(
                x_flat, real_flat, emb_params, gen_params,
                self.discriminator.params)
            data_dict["embedding"] = emb
            data_dict["fake_image"] = fake_flat.reshape(
                (B,) + self.generator.image_shape)
            data_dict.update(target_dict)
            data_dict["fake_score"] = fake_score
            data_dict["real_score"] = real_score
            # losses computed inside the fused kernel; criteria repackage them
            data_dict["_adversarial_G"] = g_adv
            data_dict["_adversarial_D"] = d_adv
            data_dict["_l1_G"] = l1
        else:
            emb, fake_flat = _fused_forward_gen(x_flat, emb_params, gen_params)
            data_dict["embedding"] = emb
            data_dict["fake_image"] = fake_flat.reshape(
                (B,) + self.generator.image_shape)
            data_dict.update(target_dict)

        losses_G_dict = {}
        losses_D_dict = {}
        for criterion in self.criterion_list:
            try:
                crit_out = criterion(data_dict)
            except Exception:
                if self.compute_losses:
                    raise
                else:
                    continue
            if isinstance(crit_out, tuple):
                if len(crit_out) != 2:
                    raise TypeError("Unexpected number of criterion outputs")
                crit_out_G, crit_out_D = crit_out
                losses_G_dict.update(crit_out_G)
                losses_D_dict.update(crit_out_D)
            elif isinstance(crit_out, dict):
                losses_G_dict.update(crit_out)
            else:
                raise TypeError("Unexpected criterion output type")
        return data_dict, losses_G_dict, losses_D_dict

    # TODO(synk): compute_metrics / Meter aggregation has no compute hot path;
    # metric_list kept for interface parity only.


# ----------------------------------------------------------------------------
# main
# ----------------------------------------------------------------------------

if __name__ == "__main__":
    B, C, H, W = 2, 4, 16, 16
    E = 32
    in_dim = C * H * W

    key = jax.random.PRNGKey(0)
    k_img, k_real, k_emb, k_gen, k_dis = jax.random.split(key, 5)

    x = jax.random.normal(k_img, (B, C, H, W), jnp.float32)
    real = jax.random.normal(k_real, (B, C, H, W), jnp.float32)

    embedder = Embedder(k_emb, in_dim, E)
    generator = Generator(k_gen, E, (C, H, W))
    discriminator = Discriminator(k_dis, in_dim)

    tm = TrainingModule(
        embedder, generator, discriminator,
        criterion_list=[AdversarialCriterion(), L1Criterion()],
        metric_list=[],
        running_averages={},
    )

    data_dict = {"image": x}
    target_dict = {"real_image": real}

    out_dict, losses_G, losses_D = tm.forward(data_dict, target_dict)

    # exercise the running-average path too (same shapes/dtypes -> reuses the
    # already-compiled fused executable)
    tm.update_running_average(alpha=0.5)
    tm.set_use_running_averages(True)
    out_dict2, losses_G2, losses_D2 = tm.forward(data_dict, target_dict)
    tm.set_use_running_averages(False)

    for d in (losses_G, losses_D, losses_G2, losses_D2):
        for v in d.values():
            jax.block_until_ready(v)
    jax.block_until_ready(out_dict["fake_image"])
    jax.block_until_ready(out_dict["fake_score"])
    jax.block_until_ready(out_dict["real_score"])
    jax.block_until_ready(out_dict["embedding"])

    print("KERNEL_OK")
</pallas_src>

<mosaic_0001>
module attributes {stable_mosaic.version = 11 : i64} {
  func.func @_fused_full_kernel(%arg0: i32, %arg1: memref<2x1024xf32, #tpu.memory_space<vmem>>, %arg2: memref<2x1024xf32, #tpu.memory_space<vmem>>, %arg3: memref<1024x32xbf16, #tpu.memory_space<vmem>>, %arg4: memref<1x32xf32, #tpu.memory_space<vmem>>, %arg5: memref<32x1024xbf16, #tpu.memory_space<vmem>>, %arg6: memref<1x1024xf32, #tpu.memory_space<vmem>>, %arg7: memref<1x1024xf32, #tpu.memory_space<vmem>>, %arg8: memref<1x1xf32, #tpu.memory_space<vmem>>, %arg9: memref<2x32xf32, #tpu.memory_space<vmem>>, %arg10: memref<2x1024xf32, #tpu.memory_space<vmem>>, %arg11: memref<2x1xf32, #tpu.memory_space<vmem>>, %arg12: memref<2x1xf32, #tpu.memory_space<vmem>>, %arg13: memref<1x1xf32, #tpu.memory_space<vmem>>, %arg14: memref<1x1xf32, #tpu.memory_space<vmem>>, %arg15: memref<1x1xf32, #tpu.memory_space<vmem>>) attributes {dimension_semantics = [#tpu.dimension_semantics<arbitrary>], iteration_bounds = array<i64: 1>, scalar_prefetch = 0 : i64, scratch_operands = 0 : i64, tpu.core_type = #tpu.core_type<tc>, window_params = [{pipeline_mode = #tpu.pipeline_mode<synchronous>, transform_indices = @transform_0, window_bounds = array<i64: 2, 1024>}, {pipeline_mode = #tpu.pipeline_mode<synchronous>, transform_indices = @transform_1, window_bounds = array<i64: 2, 1024>}, {pipeline_mode = #tpu.pipeline_mode<synchronous>, transform_indices = @transform_2, window_bounds = array<i64: 1024, 32>}, {pipeline_mode = #tpu.pipeline_mode<synchronous>, transform_indices = @transform_3, window_bounds = array<i64: 1, 32>}, {pipeline_mode = #tpu.pipeline_mode<synchronous>, transform_indices = @transform_4, window_bounds = array<i64: 32, 1024>}, {pipeline_mode = #tpu.pipeline_mode<synchronous>, transform_indices = @transform_5, window_bounds = array<i64: 1, 1024>}, {pipeline_mode = #tpu.pipeline_mode<synchronous>, transform_indices = @transform_6, window_bounds = array<i64: 1, 1024>}, {pipeline_mode = #tpu.pipeline_mode<synchronous>, transform_indices = @transform_7, window_bounds = array<i64: 1, 1>}, {pipeline_mode = #tpu.pipeline_mode<synchronous>, transform_indices = @transform_8, window_bounds = array<i64: 2, 32>}, {pipeline_mode = #tpu.pipeline_mode<synchronous>, transform_indices = @transform_9, window_bounds = array<i64: 2, 1024>}, {pipeline_mode = #tpu.pipeline_mode<synchronous>, transform_indices = @transform_10, window_bounds = array<i64: 2, 1>}, {pipeline_mode = #tpu.pipeline_mode<synchronous>, transform_indices = @transform_11, window_bounds = array<i64: 2, 1>}, {pipeline_mode = #tpu.pipeline_mode<synchronous>, transform_indices = @transform_12, window_bounds = array<i64: 1, 1>}, {pipeline_mode = #tpu.pipeline_mode<synchronous>, transform_indices = @transform_13, window_bounds = array<i64: 1, 1>}, {pipeline_mode = #tpu.pipeline_mode<synchronous>, transform_indices = @transform_14, window_bounds = array<i64: 1, 1>}]} {
    %c0 = arith.constant 0 : index
    %c0_0 = arith.constant 0 : index
    %0 = vector.load %arg1[%c0, %c0_0] : memref<2x1024xf32, #tpu.memory_space<vmem>>, vector<2x1024xf32>
    %c0_1 = arith.constant 0 : index
    %c0_2 = arith.constant 0 : index
    %1 = vector.load %arg2[%c0_1, %c0_2] : memref<2x1024xf32, #tpu.memory_space<vmem>>, vector<2x1024xf32>
    %2 = arith.truncf %0 : vector<2x1024xf32> to vector<2x1024xbf16>
    %c0_3 = arith.constant 0 : index
    %c0_4 = arith.constant 0 : index
    %3 = vector.load %arg3[%c0_3, %c0_4] : memref<1024x32xbf16, #tpu.memory_space<vmem>>, vector<1024x32xbf16>
    %cst = arith.constant dense<0.000000e+00> : vector<2x32xf32>
    %4 = tpu.matmul %2, %3, %cst {dimension_numbers = #tpu.dot_dimension_numbers<[1], [0], [0], [1], [0, 0, 1, 1], [], []>} : vector<2x1024xbf16>, vector<1024x32xbf16>, vector<2x32xf32> -> vector<2x32xf32>
    %c0_5 = arith.constant 0 : index
    %c0_6 = arith.constant 0 : index
    %5 = vector.load %arg4[%c0_5, %c0_6] : memref<1x32xf32, #tpu.memory_space<vmem>>, vector<1x32xf32>
    %6 = vector.broadcast %5 : vector<1x32xf32> to vector<2x32xf32>
    %7 = arith.addf %4, %6 : vector<2x32xf32>
    %cst_7 = arith.constant 0.000000e+00 : f32
    %8 = vector.broadcast %cst_7 : f32 to vector<2x32xf32>
    %9 = arith.maximumf %7, %8 : vector<2x32xf32>
    %c0_8 = arith.constant 0 : index
    %c0_9 = arith.constant 0 : index
    %10 = vector.load %arg9[%c0_8, %c0_9] : memref<2x32xf32, #tpu.memory_space<vmem>>, vector<2x32xf32>
    tpu.vector_store %arg9[%c0_8, %c0_9], %9 {strides = array<i32>} : memref<2x32xf32, #tpu.memory_space<vmem>>, vector<2x32xf32>,
    %11 = arith.truncf %9 : vector<2x32xf32> to vector<2x32xbf16>
    %c0_10 = arith.constant 0 : index
    %c0_11 = arith.constant 0 : index
    %12 = vector.load %arg5[%c0_10, %c0_11] : memref<32x1024xbf16, #tpu.memory_space<vmem>>, vector<32x1024xbf16>
    %cst_12 = arith.constant dense<0.000000e+00> : vector<2x1024xf32>
    %13 = tpu.matmul %11, %12, %cst_12 {dimension_numbers = #tpu.dot_dimension_numbers<[1], [0], [0], [1], [0, 0, 1, 1], [], []>} : vector<2x32xbf16>, vector<32x1024xbf16>, vector<2x1024xf32> -> vector<2x1024xf32>
    %c0_13 = arith.constant 0 : index
    %c0_14 = arith.constant 0 : index
    %14 = vector.load %arg6[%c0_13, %c0_14] : memref<1x1024xf32, #tpu.memory_space<vmem>>, vector<1x1024xf32>
    %15 = vector.broadcast %14 : vector<1x1024xf32> to vector<2x1024xf32>
    %16 = arith.addf %13, %15 : vector<2x1024xf32>
    %17 = math.tanh %16 : vector<2x1024xf32>
    %c0_15 = arith.constant 0 : index
    %c0_16 = arith.constant 0 : index
    %18 = vector.load %arg10[%c0_15, %c0_16] : memref<2x1024xf32, #tpu.memory_space<vmem>>, vector<2x1024xf32>
    tpu.vector_store %arg10[%c0_15, %c0_16], %17 {strides = array<i32>} : memref<2x1024xf32, #tpu.memory_space<vmem>>, vector<2x1024xf32>,
    %c0_17 = arith.constant 0 : index
    %c0_18 = arith.constant 0 : index
    %19 = vector.load %arg7[%c0_17, %c0_18] : memref<1x1024xf32, #tpu.memory_space<vmem>>, vector<1x1024xf32>
    %c0_19 = arith.constant 0 : index
    %c0_20 = arith.constant 0 : index
    %20 = vector.load %arg8[%c0_19, %c0_20] : memref<1x1xf32, #tpu.memory_space<vmem>>, vector<1x1xf32>
    %21 = vector.broadcast %19 : vector<1x1024xf32> to vector<2x1024xf32>
    %22 = arith.mulf %17, %21 : vector<2x1024xf32>
    %cst_21 = arith.constant dense<0.000000e+00> : vector<2xf32>
    %23 = vector.multi_reduction <add>, %22, %cst_21 [1] : vector<2x1024xf32> to vector<2xf32>
    %24 = vector.shape_cast %23 : vector<2xf32> to vector<2x1xf32>
    %25 = vector.broadcast %20 : vector<1x1xf32> to vector<2x1xf32>
    %26 = arith.addf %24, %25 : vector<2x1xf32>
    %27 = vector.broadcast %19 : vector<1x1024xf32> to vector<2x1024xf32>
    %28 = arith.mulf %1, %27 : vector<2x1024xf32>
    %cst_22 = arith.constant dense<0.000000e+00> : vector<2xf32>
    %29 = vector.multi_reduction <add>, %28, %cst_22 [1] : vector<2x1024xf32> to vector<2xf32>
    %30 = vector.shape_cast %29 : vector<2xf32> to vector<2x1xf32>
    %31 = vector.broadcast %20 : vector<1x1xf32> to vector<2x1xf32>
    %32 = arith.addf %30, %31 : vector<2x1xf32>
    %c0_23 = arith.constant 0 : index
    %c0_24 = arith.constant 0 : index
    %33 = vector.load %arg11[%c0_23, %c0_24] : memref<2x1xf32, #tpu.memory_space<vmem>>, vector<2x1xf32>
    tpu.vector_store %arg11[%c0_23, %c0_24], %26 {strides = array<i32>} : memref<2x1xf32, #tpu.memory_space<vmem>>, vector<2x1xf32>,
    %c0_25 = arith.constant 0 : index
    %c0_26 = arith.constant 0 : index
    %34 = vector.load %arg12[%c0_25, %c0_26] : memref<2x1xf32, #tpu.memory_space<vmem>>, vector<2x1xf32>
    tpu.vector_store %arg12[%c0_25, %c0_26], %32 {strides = array<i32>} : memref<2x1xf32, #tpu.memory_space<vmem>>, vector<2x1xf32>,
    %cst_27 = arith.constant dense<0.000000e+00> : vector<1xf32>
    %35 = vector.multi_reduction <add>, %26, %cst_27 [0] : vector<2x1xf32> to vector<1xf32>
    %36 = vector.shape_cast %35 : vector<1xf32> to vector<1x1xf32>
    %cst_28 = arith.constant 0.000000e+00 : f32
    %37 = vector.broadcast %cst_28 : f32 to vector<1x1xf32>
    %38 = arith.subf %37, %36 : vector<1x1xf32>
    %cst_29 = arith.constant 2.000000e+00 : f32
    %39 = vector.broadcast %cst_29 : f32 to vector<1x1xf32>
    %40 = arith.divf %38, %39 : vector<1x1xf32>
    %c0_30 = arith.constant 0 : index
    %c0_31 = arith.constant 0 : index
    %41 = vector.load %arg13[%c0_30, %c0_31] : memref<1x1xf32, #tpu.memory_space<vmem>>, vector<1x1xf32>
    tpu.vector_store %arg13[%c0_30, %c0_31], %40 {strides = array<i32>} : memref<1x1xf32, #tpu.memory_space<vmem>>, vector<1x1xf32>,
    %cst_32 = arith.constant 1.000000e+00 : f32
    %42 = vector.broadcast %cst_32 : f32 to vector<2x1xf32>
    %43 = arith.subf %42, %32 : vector<2x1xf32>
    %cst_33 = arith.constant 0.000000e+00 : f32
    %44 = vector.broadcast %cst_33 : f32 to vector<2x1xf32>
    %45 = arith.maximumf %44, %43 : vector<2x1xf32>
    %cst_34 = arith.constant 1.000000e+00 : f32
    %46 = vector.broadcast %cst_34 : f32 to vector<2x1xf32>
    %47 = arith.addf %46, %26 : vector<2x1xf32>
    %cst_35 = arith.constant 0.000000e+00 : f32
    %48 = vector.broadcast %cst_35 : f32 to vector<2x1xf32>
    %49 = arith.maximumf %48, %47 : vector<2x1xf32>
    %50 = arith.addf %45, %49 : vector<2x1xf32>
    %cst_36 = arith.constant dense<0.000000e+00> : vector<1xf32>
    %51 = vector.multi_reduction <add>, %50, %cst_36 [0] : vector<2x1xf32> to vector<1xf32>
    %52 = vector.shape_cast %51 : vector<1xf32> to vector<1x1xf32>
    %cst_37 = arith.constant 2.000000e+00 : f32
    %53 = vector.broadcast %cst_37 : f32 to vector<1x1xf32>
    %54 = arith.divf %52, %53 : vector<1x1xf32>
    %c0_38 = arith.constant 0 : index
    %c0_39 = arith.constant 0 : index
    %55 = vector.load %arg14[%c0_38, %c0_39] : memref<1x1xf32, #tpu.memory_space<vmem>>, vector<1x1xf32>
    tpu.vector_store %arg14[%c0_38, %c0_39], %54 {strides = array<i32>} : memref<1x1xf32, #tpu.memory_space<vmem>>, vector<1x1xf32>,
    %56 = arith.subf %17, %1 : vector<2x1024xf32>
    %57 = math.absf %56 : vector<2x1024xf32>
    %cst_40 = arith.constant dense<0.000000e+00> : vector<2xf32>
    %58 = vector.multi_reduction <add>, %57, %cst_40 [1] : vector<2x1024xf32> to vector<2xf32>
    %59 = vector.shape_cast %58 : vector<2xf32> to vector<2x1xf32>
    %cst_41 = arith.constant dense<0.000000e+00> : vector<1xf32>
    %60 = vector.multi_reduction <add>, %59, %cst_41 [0] : vector<2x1xf32> to vector<1xf32>
    %61 = vector.shape_cast %60 : vector<1xf32> to vector<1x1xf32>
    %cst_42 = arith.constant 2.048000e+03 : f32
    %62 = vector.broadcast %cst_42 : f32 to vector<1x1xf32>
    %63 = arith.divf %61, %62 : vector<1x1xf32>
    %c0_43 = arith.constant 0 : index
    %c0_44 = arith.constant 0 : index
    %64 = vector.load %arg15[%c0_43, %c0_44] : memref<1x1xf32, #tpu.memory_space<vmem>>, vector<1x1xf32>
    tpu.vector_store %arg15[%c0_43, %c0_44], %63 {strides = array<i32>} : memref<1x1xf32, #tpu.memory_space<vmem>>, vector<1x1xf32>,
    return
  }
  func.func @transform_0(%arg0: i32) -> (i32, i32) {
    %c0_i32 = arith.constant 0 : i32
    %c0_i32_0 = arith.constant 0 : i32
    %c0_i32_1 = arith.constant 0 : i32
    return %c0_i32, %c0_i32_0 : i32, i32
  }
  func.func @transform_1(%arg0: i32) -> (i32, i32) {
    %c0_i32 = arith.constant 0 : i32
    %c0_i32_0 = arith.constant 0 : i32
    %c0_i32_1 = arith.constant 0 : i32
    return %c0_i32, %c0_i32_0 : i32, i32
  }
  func.func @transform_2(%arg0: i32) -> (i32, i32) {
    %c0_i32 = arith.constant 0 : i32
    %c0_i32_0 = arith.constant 0 : i32
    %c0_i32_1 = arith.constant 0 : i32
    return %c0_i32, %c0_i32_0 : i32, i32
  }
  func.func @transform_3(%arg0: i32) -> (i32, i32) {
    %c0_i32 = arith.constant 0 : i32
    %c0_i32_0 = arith.constant 0 : i32
    %c0_i32_1 = arith.constant 0 : i32
    return %c0_i32, %c0_i32_0 : i32, i32
  }
  func.func @transform_4(%arg0: i32) -> (i32, i32) {
    %c0_i32 = arith.constant 0 : i32
    %c0_i32_0 = arith.constant 0 : i32
    %c0_i32_1 = arith.constant 0 : i32
    return %c0_i32, %c0_i32_0 : i32, i32
  }
  func.func @transform_5(%arg0: i32) -> (i32, i32) {
    %c0_i32 = arith.constant 0 : i32
    %c0_i32_0 = arith.constant 0 : i32
    %c0_i32_1 = arith.constant 0 : i32
    return %c0_i32, %c0_i32_0 : i32, i32
  }
  func.func @transform_6(%arg0: i32) -> (i32, i32) {
    %c0_i32 = arith.constant 0 : i32
    %c0_i32_0 = arith.constant 0 : i32
    %c0_i32_1 = arith.constant 0 : i32
    return %c0_i32, %c0_i32_0 : i32, i32
  }
  func.func @transform_7(%arg0: i32) -> (i32, i32) {
    %c0_i32 = arith.constant 0 : i32
    %c0_i32_0 = arith.constant 0 : i32
    %c0_i32_1 = arith.constant 0 : i32
    return %c0_i32, %c0_i32_0 : i32, i32
  }
  func.func @transform_8(%arg0: i32) -> (i32, i32) {
    %c0_i32 = arith.constant 0 : i32
    %c0_i32_0 = arith.constant 0 : i32
    %c0_i32_1 = arith.constant 0 : i32
    return %c0_i32, %c0_i32_0 : i32, i32
  }
  func.func @transform_9(%arg0: i32) -> (i32, i32) {
    %c0_i32 = arith.constant 0 : i32
    %c0_i32_0 = arith.constant 0 : i32
    %c0_i32_1 = arith.constant 0 : i32
    return %c0_i32, %c0_i32_0 : i32, i32
  }
  func.func @transform_10(%arg0: i32) -> (i32, i32) {
    %c0_i32 = arith.constant 0 : i32
    %c0_i32_0 = arith.constant 0 : i32
    %c0_i32_1 = arith.constant 0 : i32
    return %c0_i32, %c0_i32_0 : i32, i32
  }
  func.func @transform_11(%arg0: i32) -> (i32, i32) {
    %c0_i32 = arith.constant 0 : i32
    %c0_i32_0 = arith.constant 0 : i32
    %c0_i32_1 = arith.constant 0 : i32
    return %c0_i32, %c0_i32_0 : i32, i32
  }
  func.func @transform_12(%arg0: i32) -> (i32, i32) {
    %c0_i32 = arith.constant 0 : i32
    %c0_i32_0 = arith.constant 0 : i32
    %c0_i32_1 = arith.constant 0 : i32
    return %c0_i32, %c0_i32_0 : i32, i32
  }
  func.func @transform_13(%arg0: i32) -> (i32, i32) {
    %c0_i32 = arith.constant 0 : i32
    %c0_i32_0 = arith.constant 0 : i32
    %c0_i32_1 = arith.constant 0 : i32
    return %c0_i32, %c0_i32_0 : i32, i32
  }
  func.func @transform_14(%arg0: i32) -> (i32, i32) {
    %c0_i32 = arith.constant 0 : i32
    %c0_i32_0 = arith.constant 0 : i32
    %c0_i32_1 = arith.constant 0 : i32
    return %c0_i32, %c0_i32_0 : i32, i32
  }
}

</mosaic_0001>

<bundles_post_ra>
// kernel: _fused_forward_full.1
= control target key start
LH: loop header
LB: loop body
LE: loop exit
PB: predicated region body
PF: predicated region fallthrough
CT: control target
= control target key end

     0   :  { %s2359_s0 = inlined_call_operand.vmem [shape: f32[2,1024], index: 0, kind: input, shape index: {}]   ;;  %s2360_s1 = inlined_call_operand.vmem [shape: f32[2,1024], index: 1, kind: input, shape index: {}]   ;;  %s2361_s2 = inlined_call_operand.vmem [shape: bf16[1024,32], index: 2, kind: input, shape index: {}]   ;;  %s2362_s3 = inlined_call_operand.vmem [shape: f32[1,32], index: 3, kind: input, shape index: {}]   ;;  %s2363_s4 = inlined_call_operand.vmem [shape: bf16[32,1024], index: 4, kind: input, shape index: {}]   ;;  %s2364_s5 = inlined_call_operand.vmem [shape: f32[1,1024], index: 5, kind: input, shape index: {}]   ;;  %s2365_s6 = inlined_call_operand.vmem [shape: f32[1,1024], index: 6, kind: input, shape index: {}]   ;;  %s2366_s7 = inlined_call_operand.<no memory space> [shape: f32[1,1], index: 7, kind: input, shape index: {}]   ;;  %s2367_s8 = inlined_call_operand.hbm [shape: f32[2,32], index: 8, kind: output, shape index: {0}]   ;;  %s2368_s9 = inlined_call_operand.hbm [shape: f32[2,1024], index: 9, kind: output, shape index: {1}]   ;;  %s2369_s10 = inlined_call_operand.vmem [shape: f32[2,1], index: 10, kind: output, shape index: {2}]   ;;  %s2370_s11 = inlined_call_operand.vmem [shape: f32[2,1], index: 11, kind: output, shape index: {3}]   ;;  %s2371_s12 = inlined_call_operand.hbm [shape: f32[1,1], index: 12, kind: output, shape index: {4}]   ;;  %s2372_s13 = inlined_call_operand.hbm [shape: f32[1,1], index: 13, kind: output, shape index: {5}]   ;;  %s2373_s14 = inlined_call_operand.hbm [shape: f32[1,1], index: 14, kind: output, shape index: {6}]  }
   0x1   :  { %v20_v0 = vstv %s2366_s7 }
   0x2   :  { %21 = vst [vmem:[#allocation2] sm:$0x1] %v20_v0 }
   0x3   :  { %22 = vsyncpa [#allocation4], 0 }
   0x4   :  { %23 = vsyncpa [#allocation6], 0  ;;  %v1690_v1 = vld [vmem:[%s2361_s2 + $0x78] sm:$0xff]   ;;  %v1694_v5 = vld [vmem:[%s2361_s2 + $0x70] sm:$0xff]   ;;  %v52_v29 = vlaneseq  ;;  %v1880_v37 = vmov 1983009808  }
   0x5   :  { %v1691_v2 = vld [vmem:[%s2361_s2 + $0xf8] sm:$0xff]   ;;  %1595 = vmatprep.subr.bf16.mxu0 %v1690_v1  ;;  %v1695_v6 = vld [vmem:[%s2361_s2 + $0xf0] sm:$0xff]   ;;  %v1698_v9 = vld [vmem:[%s2361_s2 + $0x68] sm:$0xff]   ;;  %v50_v38 = vunpack.c.l.s4 %v1880_v37 }
   0x6   :  { %v1692_v3 = vld [vmem:[%s2361_s2 + $0x38] sm:$0xff]   ;;  %1617 = vmatprep.subr.bf16.mxu1 %v1691_v2  ;;  %v1696_v7 = vld [vmem:[%s2361_s2 + $0x30] sm:$0xff]   ;;  %v1699_v10 = vld [vmem:[%s2361_s2 + $0xe8] sm:$0xff]   ;;  %v2061_v34 = vshrl.u32 %v52_v29, 7 }
   0x7   :  { %v1693_v4 = vld [vmem:[%s2361_s2 + $0xb8] sm:$0xff]   ;;  %1596 = vmatpush3.bf16.msra.mxu0 %v1692_v3  ;;  %v1697_v8 = vld [vmem:[%s2361_s2 + $0xb0] sm:$0xff]   ;;  %v1700_v11 = vld [vmem:[%s2361_s2 + $0x28] sm:$0xff]   ;;  %v51_v40 = vunpack.c.0.s8 %v50_v38 }
   0x8   :  { %1618 = vmatpush3.bf16.msra.mxu1 %v1693_v4  ;;  %1597 = vmatprep.subr.bf16.mxu0 %v1694_v5  ;;  %v1701_v12 = vld [vmem:[%s2361_s2 + $0xa8] sm:$0xff]   ;;  %v1702_v13 = vld [vmem:[%s2361_s2 + $0x60] sm:$0xff]   ;;  %v1706_v17 = vld [vmem:[%s2361_s2 + $0x58] sm:$0xff]  }
   0x9   :  { %1619 = vmatprep.subr.bf16.mxu1 %v1695_v6  ;;  %v1703_v14 = vld [vmem:[%s2361_s2 + $0xe0] sm:$0xff]   ;;  %v1707_v18 = vld [vmem:[%s2361_s2 + $0xd8] sm:$0xff]   ;;  %v1710_v21 = vld [vmem:[%s2361_s2 + $0x50] sm:$0xff]   ;;  %v2073_v42 = vsub.s32 %v51_v40, %v2061_v34 }
   0xa   :  { %v1704_v15 = vld [vmem:[%s2361_s2 + $0x20] sm:$0xff]   ;;  %v1708_v19 = vld [vmem:[%s2361_s2 + $0x18] sm:$0xff]   ;;  %v1711_v22 = vld [vmem:[%s2361_s2 + $0xd0] sm:$0xff]  }
   0xb   :  { %1598 = vmatpush3.bf16.msra.mxu0 %v1696_v7  ;;  %v1705_v16 = vld [vmem:[%s2361_s2 + $0xa0] sm:$0xff]   ;;  %v1709_v20 = vld [vmem:[%s2361_s2 + $0x98] sm:$0xff]   ;;  %v1712_v23 = vld [vmem:[%s2361_s2 + $0x10] sm:$0xff]  }
   0xc   :  { %1620 = vmatpush3.bf16.msra.mxu1 %v1697_v8  ;;  %1599 = vmatprep.subr.bf16.mxu0 %v1698_v9  ;;  %v1713_v24 = vld [vmem:[%s2361_s2 + $0x90] sm:$0xff]   ;;  %v1714_v25 = vld [vmem:[%s2361_s2 + $0x48] sm:$0xff]   ;;  %v1718_v30 = vld [vmem:[%s2361_s2 + $0x40] sm:$0xff]  }
   0xd   :  { %1621 = vmatprep.subr.bf16.mxu1 %v1699_v10  ;;  %v1715_v26 = vld [vmem:[%s2361_s2 + $0xc8] sm:$0xff]   ;;  %v1719_v31 = vld [vmem:[%s2361_s2 + $0xc0] sm:$0xff]   ;;  %v1723_v36 = vld [vmem:[%s2361_s2 + $0x178] sm:$0xff]  }
   0xe   :  { %v1716_v27 = vld [vmem:[%s2361_s2 + $0x8] sm:$0xff]   ;;  %v1720_v32 = vld [vmem:[%s2361_s2] sm:$0xff]   ;;  %v1724_v39 = vld [vmem:[%s2361_s2 + $0x1f8] sm:$0xff]  }
   0xf   :  { %1600 = vmatpush3.bf16.msra.mxu0 %v1700_v11  ;;  %v1717_v28 = vld [vmem:[%s2361_s2 + $0x88] sm:$0xff]   ;;  %v1721_v33 = vld [vmem:[%s2361_s2 + $0x80] sm:$0xff]   ;;  %v1725_v47 = vld [vmem:[%s2361_s2 + $0x138] sm:$0xff]  }
  0x10   :  { %1622 = vmatpush3.bf16.msra.mxu1 %v1701_v12  ;;  %1601 = vmatprep.subr.bf16.mxu0 %v1702_v13  ;;  %v42_v35 = vld [vmem:[%s2359_s0] sm:$0xff]  ;;  %v1726_v50 = vld [vmem:[%s2361_s2 + $0x1b8] sm:$0xff]   ;;  %v1727_v53 = vld [vmem:[%s2361_s2 + $0x170] sm:$0xff]  }
  0x11   :  { %1623 = vmatprep.subr.bf16.mxu1 %v1703_v14  ;;  %v48_v41 = vcombine.high %v42_v35, %v42_v35  ;;  %v55_v43 = vrot.slane %v42_v35, %v2073_v42  ;;  %v1728_v54 = vld [vmem:[%s2361_s2 + $0x1f0] sm:$0xff]   ;;  %v1731_v57 = vld [vmem:[%s2361_s2 + $0x168] sm:$0xff]   ;;  %v1735_v61 = vld [vmem:[%s2361_s2 + $0x160] sm:$0xff]  }
  0x12   :  { %v1729_v55 = vld [vmem:[%s2361_s2 + $0x130] sm:$0xff]   ;;  %v1732_v58 = vld [vmem:[%s2361_s2 + $0x1e8] sm:$0xff]   ;;  %v1736_v62 = vld [vmem:[%s2361_s2 + $0x1e0] sm:$0xff]  }
  0x13   :  { %1602 = vmatpush3.bf16.msra.mxu0 %v1704_v15  ;;  %v62_v44 = vrot.slane %v48_v41, %v2073_v42  ;;  %v63_v45 = vcombine.high %v55_v43, %v55_v43  ;;  %v90_v48 = vpack.c.bf16 %v55_v43, %v55_v43  ;;  %v1730_v56 = vld [vmem:[%s2361_s2 + $0x1b0] sm:$0xff]   ;;  %v1733_v59 = vld [vmem:[%s2361_s2 + $0x128] sm:$0xff]   ;;  %v1737_v63 = vld [vmem:[%s2361_s2 + $0x120] sm:$0xff]  }
  0x14   :  { %1624 = vmatpush3.bf16.msra.mxu1 %v1705_v16  ;;  %1603 = vmatprep.subr.bf16.mxu0 %v1706_v17  ;;  %v1734_v60 = vld [vmem:[%s2361_s2 + $0x1a8] sm:$0xff]   ;;  %v1738_v0 = vld [vmem:[%s2361_s2 + $0x1a0] sm:$0xff]   ;;  %v1739_v1 = vld [vmem:[%s2361_s2 + $0x158] sm:$0xff]  }
  0x15   :  { %1625 = vmatprep.subr.bf16.mxu1 %v1707_v18  ;;  %v64_v46 = vcombine.high %v62_v44, %v62_v44  ;;  %v92_v49 = vpack.c.bf16 %v62_v44, %v62_v44  ;;  %v91_v51 = vpack.c.bf16 %v63_v45, %v63_v45  ;;  %v1740_v2 = vld [vmem:[%s2361_s2 + $0x1d8] sm:$0xff]   ;;  %v1743_v5 = vld [vmem:[%s2361_s2 + $0x150] sm:$0xff]   ;;  %v1747_v9 = vld [vmem:[%s2361_s2 + $0x148] sm:$0xff]  }
  0x16   :  { %v1741_v3 = vld [vmem:[%s2361_s2 + $0x118] sm:$0xff]   ;;  %v1744_v6 = vld [vmem:[%s2361_s2 + $0x1d0] sm:$0xff]   ;;  %v1748_v10 = vld [vmem:[%s2361_s2 + $0x1c8] sm:$0xff]  }
  0x17   :  { %1604 = vmatpush3.bf16.msra.mxu0 %v1708_v19  ;;  %v93_v52 = vpack.c.bf16 %v64_v46, %v64_v46  ;;  %649 = vmatprep.mubr.bf16.mxu0 %v91_v51  ;;  %v1742_v4 = vld [vmem:[%s2361_s2 + $0x198] sm:$0xff]   ;;  %v1745_v7 = vld [vmem:[%s2361_s2 + $0x110] sm:$0xff]   ;;  %v43_v11 = vld [vmem:[%s2359_s0 + $0x8] sm:$0xff] }
  0x18   :  { %1626 = vmatpush3.bf16.msra.mxu1 %v1709_v20  ;;  %1605 = vmatprep.subr.bf16.mxu0 %v1710_v21  ;;  %v1746_v8 = vld [vmem:[%s2361_s2 + $0x190] sm:$0xff]  }
  0x19   :  { %1627 = vmatprep.subr.bf16.mxu1 %v1711_v22  ;;  %689 = vmatprep.mubr.bf16.mxu1 %v93_v52 }
  0x1b   :  { %1606 = vmatpush3.bf16.msra.mxu0 %v1712_v23 }
  0x1c   :  { %1628 = vmatpush3.bf16.msra.mxu1 %v1713_v24  ;;  %1607 = vmatprep.subr.bf16.mxu0 %v1714_v25 }
  0x1d   :  { %1629 = vmatprep.subr.bf16.mxu1 %v1715_v26 }
  0x1f   :  { %1608 = vmatpush3.bf16.msra.mxu0 %v1716_v27 }
  0x20   :  { %1630 = vmatpush3.bf16.msra.mxu1 %v1717_v28  ;;  %1609 = vmatprep.subr.bf16.mxu0 %v1718_v30 }
  0x21   :  { %1631 = vmatprep.subr.bf16.mxu1 %v1719_v31 }
  0x23   :  { %1610 = vmatpush3.bf16.msra.mxu0 %v1720_v32 }
  0x24   :  { %1632 = vmatpush3.bf16.msra.mxu1 %v1721_v33  ;;  %1639 = vmatprep.subr.bf16.mxu0 %v1723_v36 }
  0x25   :  { %1661 = vmatprep.subr.bf16.mxu1 %v1724_v39 }
  0x26   :  { %650 = vmatmul.mubr.bf16.vlgmr.msra.gmra.mxu0 %v90_v48 }
  0x27   :  { %690 = vmatmul.mubr.bf16.vlgmr.msra.gmra.mxu1 %v92_v49  ;;  %1640 = vmatpush3.bf16.msra.mxu0 %v1725_v47 }
  0x28   :  { %1662 = vmatpush3.bf16.msra.mxu1 %v1726_v50  ;;  %1641 = vmatprep.subr.bf16.mxu0 %v1727_v53 }
  0x29   :  { %1663 = vmatprep.subr.bf16.mxu1 %v1728_v54 }
  0x2b   :  { %1642 = vmatpush3.bf16.msra.mxu0 %v1729_v55 }
  0x2c   :  { %1664 = vmatpush3.bf16.msra.mxu1 %v1730_v56  ;;  %1643 = vmatprep.subr.bf16.mxu0 %v1731_v57 }
  0x2d   :  { %1665 = vmatprep.subr.bf16.mxu1 %v1732_v58 }
  0x2f   :  { %1644 = vmatpush3.bf16.msra.mxu0 %v1733_v59 }
  0x30   :  { %1666 = vmatpush3.bf16.msra.mxu1 %v1734_v60  ;;  %1645 = vmatprep.subr.bf16.mxu0 %v1735_v61 }
  0x31   :  { %1667 = vmatprep.subr.bf16.mxu1 %v1736_v62 }
  0x33   :  { %1646 = vmatpush3.bf16.msra.mxu0 %v1737_v63 }
  0x34   :  { %1668 = vmatpush3.bf16.msra.mxu1 %v1738_v0  ;;  %1647 = vmatprep.subr.bf16.mxu0 %v1739_v1 }
  0x35   :  { %1669 = vmatprep.subr.bf16.mxu1 %v1740_v2 }
  0x37   :  { %1648 = vmatpush3.bf16.msra.mxu0 %v1741_v3 }
  0x38   :  { %1670 = vmatpush3.bf16.msra.mxu1 %v1742_v4  ;;  %1649 = vmatprep.subr.bf16.mxu0 %v1743_v5 }
  0x39   :  { %1671 = vmatprep.subr.bf16.mxu1 %v1744_v6 }
  0x3a   :  { %24 = vsyncpa [#allocation9], 0  ;;  %v72_v12 = vrot.slane %v43_v11, %v2073_v42  ;;  %v65_v13 = vcombine.high %v43_v11, %v43_v11  ;;  %v1749_v14 = vld [vmem:[%s2361_s2 + $0x108] sm:$0xff]   ;;  %v1751_v18 = vld [vmem:[%s2361_s2 + $0x140] sm:$0xff]   ;;  %v1881_v51 = vmov 0   ;;  %vm778_vm0 = vcmask 254976  }
  0x3b   :  { %1650 = vmatpush3.bf16.msra.mxu0 %v1745_v7  ;;  %v1750_v15 = vld [vmem:[%s2361_s2 + $0x188] sm:$0xff]   ;;  %v1752_v19 = vld [vmem:[%s2361_s2 + $0x1c0] sm:$0xff]   ;;  %v791_v45 = vld [vmem:[%s2363_s4 + $0x50] sm:$0xff]  ;;  %vm919_vm1 = vcmask 261120   ;;  %vm1192_vm2 = vcmask 1041408  }
  0x3c   :  { %1672 = vmatpush3.bf16.msra.mxu1 %v1746_v8  ;;  %v80_v16 = vcombine.high %v72_v12, %v72_v12  ;;  %v79_v17 = vrot.slane %v65_v13, %v2073_v42  ;;  %1651 = vmatprep.subr.bf16.mxu0 %v1747_v9  ;;  %v1753_v22 = vld [vmem:[%s2361_s2 + $0x100] sm:$0xff]   ;;  %v94_v25 = vpack.c.bf16 %v72_v12, %v72_v12  ;;  %v790_v29 = vld [vmem:[%s2363_s4 + $0x48] sm:$0xff]  ;;  %v795_v46 = vld [vmem:[%s2363_s4 + $0x70] sm:$0xff] }
  0x3d   :  { %1673 = vmatprep.subr.bf16.mxu1 %v1748_v10  ;;  %v1754_v23 = vld [vmem:[%s2361_s2 + $0x180] sm:$0xff]   ;;  %v794_v31 = vld [vmem:[%s2363_s4 + $0x68] sm:$0xff]  ;;  %v792_v47 = vld [vmem:[%s2363_s4 + $0x58] sm:$0xff]  ;;  %v1586_v48 = vcombine.low %v791_v45, %v795_v46  ;;  %v1587_v49 = vcombine.high %v791_v45, %v795_v46 }
  0x3e   :  { %v95_v20 = vpack.c.bf16 %v80_v16, %v80_v16  ;;  %v81_v21 = vcombine.high %v79_v17, %v79_v17  ;;  %v96_v26 = vpack.c.bf16 %v79_v17, %v79_v17  ;;  %v789_v27 = vld [vmem:[%s2363_s4 + $0x40] sm:$0xff]  ;;  %v1584_v33 = vcombine.low %v790_v29, %v794_v31  ;;  %v782_v38 = vld [vmem:[%s2363_s4 + $0x8] sm:$0xff]  ;;  %v796_v50 = vld [vmem:[%s2363_s4 + $0x78] sm:$0xff] }
  0x3f   :  { %1652 = vmatpush3.bf16.msra.mxu0 %v1749_v14  ;;  %v793_v28 = vld [vmem:[%s2363_s4 + $0x60] sm:$0xff]  ;;  %v1585_v35 = vcombine.high %v790_v29, %v794_v31  ;;  %v786_v40 = vld [vmem:[%s2363_s4 + $0x28] sm:$0xff]  ;;  %v1588_v52 = vcombine.low %v792_v47, %v796_v50  ;;  %v1589_v53 = vcombine.high %v792_v47, %v796_v50  ;;  %v787_v16 = vld [vmem:[%s2363_s4 + $0x30] sm:$0xff]  ;;  %v813_v29 = vsub.s32 3, %v2061_v34 }
  0x40   :  { %1674 = vmatpush3.bf16.msra.mxu1 %v1750_v15  ;;  %v97_v24 = vpack.c.bf16 %v81_v21, %v81_v21  ;;  %1653 = vmatprep.subr.bf16.mxu0 %v1751_v18  ;;  %v1583_v30 = vcombine.high %v789_v27, %v793_v28  ;;  %v1582_v32 = vcombine.low %v789_v27, %v793_v28  ;;  %v781_v36 = vld [vmem:[%s2363_s4] sm:$0xff]  ;;  %v783_v15 = vld [vmem:[%s2363_s4 + $0x10] sm:$0xff]  ;;  %v784_v17 = vld [vmem:[%s2363_s4 + $0x18] sm:$0xff]  ;;  %v809_v27 = vsub.s32 2, %v2061_v34 }
  0x41   :  { %1675 = vmatprep.subr.bf16.mxu1 %v1752_v19  ;;  %729 = vmatprep.mubr.bf16.mxu0 %v95_v20  ;;  %v785_v37 = vld [vmem:[%s2363_s4 + $0x20] sm:$0xff]  ;;  %v1576_v43 = vcombine.low %v782_v38, %v786_v40  ;;  %v1577_v44 = vcombine.high %v782_v38, %v786_v40  ;;  %v788_v18 = vld [vmem:[%s2363_s4 + $0x38] sm:$0xff]  ;;  %v1579_v21 = vcombine.high %v783_v15, %v787_v16  ;;  %v805_v28 = vsub.s32 1, %v2061_v34 }
  0x42   :  { %769 = vmatprep.mubr.bf16.mxu1 %v97_v24  ;;  %v1575_v39 = vcombine.high %v781_v36, %v785_v37  ;;  %v1574_v41 = vcombine.low %v781_v36, %v785_v37  ;;  %v1509_v63 = vld [vmem:[%s2362_s3] ss:$0 sm:$0xff]  ;;  %v1580_v24 = vcombine.low %v784_v17, %v788_v18  ;;  %v817_v40 = vsub.s32 4, %v2061_v34 }
  0x43   :  { %1654 = vmatpush3.bf16.msra.mxu0 %v1753_v22  ;;  %v1581_v22 = vcombine.high %v784_v17, %v788_v18  ;;  %v2255_v45 = vld [vmem:[%s2360_s1] sm:$0xff] }
  0x44   :  { %1676 = vmatpush3.bf16.msra.mxu1 %v1754_v23  ;;  %935 = vmatprep.subr.bf16.mxu0 %v1583_v30  ;;  %v1578_v23 = vcombine.low %v783_v15, %v787_v16 }
  0x45   :  { %976 = vmatprep.subr.bf16.mxu1 %v1585_v35 }
  0x46   :  { %730 = vmatmul.mubr.bf16.vlgmr.msra.gmra.mxu0 %v94_v25  ;;  %v1141_v25 = vld [vmem:[%s2365_s6] sm:$0xff] }
  0x47   :  { %770 = vmatmul.mubr.bf16.vlgmr.msra.gmra.mxu1 %v96_v26  ;;  %936 = vmatpush1.bf16.msra.mxu0 %v1582_v32  ;;  %v801_v26 = vsub.s32 0, %v2061_v34  ;;  %v2236_v31 = vrot.slane %v1141_v25, %v809_v27  ;;  %v2238_v32 = vrot.slane %v1141_v25, %v805_v28  ;;  %v2257_v46 = vrot.slane %v1141_v25, %v817_v40 }
  0x48   :  { %977 = vmatpush1.bf16.msra.mxu1 %v1584_v33  ;;  %937 = vmatprep.subr.bf16.mxu0 %v1575_v39  ;;  %v2240_v33 = vrot.slane %v1141_v25, %v813_v29 }
  0x49   :  { %978 = vmatprep.subr.bf16.mxu1 %v1577_v44  ;;  %955 = vmatprep.mubr.bf16.mxu0 %v1881_v51  ;;  %v2234_v30 = vrot.slane %v1141_v25, %v801_v26  ;;  %v829_v44 = vsub.s32 7, %v2061_v34 }
  0x4a   :  { %996 = vmatprep.mubr.bf16.mxu1 %v1881_v51  ;;  %v1218_v36 = vcombine.low %v2236_v31, %v2240_v33 }
  0x4b   :  { %938 = vmatpush1.bf16.msra.mxu0 %v1574_v41  ;;  %v1217_v35 = vcombine.low %v2234_v30, %v2238_v32  ;;  %v825_v41 = vsub.s32 6, %v2061_v34 }
  0x4c   :  { %979 = vmatpush1.bf16.msra.mxu1 %v1576_v43  ;;  %1017 = vmatprep.subr.bf16.mxu0 %v1587_v49  ;;  %v1232_v38 = vrot.slane %v1218_v36, %v2073_v42  ;;  %v821_v43 = vsub.s32 5, %v2061_v34  ;;  %v2263_v49 = vrot.slane %v1141_v25, %v829_v44 }
  0x4d   :  { %1058 = vmatprep.subr.bf16.mxu1 %v1589_v53  ;;  %v1225_v37 = vrot.slane %v1217_v35, %v2073_v42  ;;  %v2259_v47 = vrot.slane %v1141_v25, %v825_v41  ;;  %v1355_v35 = vrot.slane %v2255_v45, %v2073_v42 }
  0x4f   :  { %v1233_v39 = vcombine.low %v1225_v37, %v1232_v38 }
  0x51   :  { %v1253_v50 = vmul.f32 %v1233_v39, %v2255_v45 }
  0x53   :  { %v1264_v53 = vrot.slane %v1253_v50, %v2073_v42 }
  0xe6   :  { %v1611_v54 = vpop.f32.mrf.mxu0 }
  0xe7   :  { %v1633_v55 = vpop.f32.mrf.mxu1 }
  0xe8   :  { %v1612_v56 = vpop.f32.mrf.mxu0 }
  0xe9   :  { %v1634_v57 = vpop.f32.mrf.mxu1  ;;  %v1613_v62 = vadd.f32 %v1612_v56, %v1611_v54 }
  0xea   :  { %v1614_v58 = vpop.f32.mrf.mxu0  ;;  %v1635_v1 = vadd.f32 %v1634_v57, %v1633_v55 }
  0xeb   :  { %v1636_v59 = vpop.f32.mrf.mxu1  ;;  %v652_v0 = vadd.f32 %v1613_v62, %v1509_v63  ;;  %v1257_v58 = vcombine.high %v1253_v50, %v1253_v50 }
  0xec   :  { %v1615_v60 = vpop.f32.mrf.mxu0 }
  0xed   :  { %v1637_v61 = vpop.f32.mrf.mxu1  ;;  %v692_v6 = vadd.f32 %v1635_v1, %v652_v0 }
  0xee   :  { %v1272_v61 = vcombine.high %v1264_v53, %v1264_v53 }
 0x106   :  { %v1655_v2 = vpop.f32.mrf.mxu0 }
 0x107   :  { %v1677_v3 = vpop.f32.mrf.mxu1 }
 0x108   :  { %v1656_v4 = vpop.f32.mrf.mxu0 }
 0x109   :  { %v1678_v5 = vpop.f32.mrf.mxu1  ;;  %v1657_v7 = vadd.f32 %v1656_v4, %v1655_v2 }
 0x10a   :  { %v1658_v8 = vpop.f32.mrf.mxu0  ;;  %v1679_v11 = vadd.f32 %v1678_v5, %v1677_v3  ;;  %v1271_v5 = vrot.slane %v1257_v58, %v2073_v42 }
 0x10b   :  { %v1680_v9 = vpop.f32.mrf.mxu1  ;;  %v732_v10 = vadd.f32 %v1657_v7, %v692_v6  ;;  %v1299_v6 = vsel %vm1192_vm2, %v1264_v53, 0.0 }
 0x10c   :  { %v1659_v12 = vpop.f32.mrf.mxu0  ;;  %v1300_v9 = vsel %vm1192_vm2, %v1272_v61, 0.0 }
 0x10d   :  { %v1681_v13 = vpop.f32.mrf.mxu1  ;;  %v772_v14 = vadd.f32 %v1679_v11, %v732_v10  ;;  %v1301_v18 = vadd.f32 %v1300_v9, %v1299_v6 }
 0x10f   :  { %v777_v19 = vmax.f32 %v772_v14, 0.0  ;;  %v45_v14 = vld [vmem:[%s2360_s1 + $0x8] sm:$0xff]  ;;  %s1882_s1 = smov [#allocation5]  }
 0x110   :  { %v1365_v50 = vcombine.high %v45_v14, %v45_v14  ;;  %s1449_s26 = sshll.u32 %s1882_s1, 4  ;;  %s1450_s26 = int_to_ptr.vmem [resolvable:$true] %s1449_s26 }
 0x111   :  { %v780_v20 = vpack.c.bf16 %v777_v19, %v777_v19  ;;  %779 = vst.msk [vmem:[#allocation3] sm:$0x3] %vm778_vm0, %v777_v19  ;;  %s1774_s27 = scalar_lea.vmem %s1450_s26, 256  ;;  %p1779_p1 = scmp.lt.s32.totalorder %s1450_s26, %s1450_s26 }
 0x112   :  { %p1775_p0 = scmp.ne.s32.totalorder %s1450_s26, %s1774_s27  ;;  %p1780_p2 = scmp.lt.s32.totalorder %s1774_s27, %s1774_s27 }
 0x113   :  { %1590 = vmatmul.mubr.msk.bf16.vlgmr.msra.gmra.mxu0 %vm919_vm1, %v780_v20  ;;  %1591 = vmatmul.mubr.msk.bf16.vlgmr.msra.gmra.mxu1 %vm919_vm1, %v780_v20 }
 0x114   :  { %1018 = vmatpush1.bf16.msra.mxu0 %v1586_v48  ;;  %1059 = vmatpush1.bf16.msra.mxu1 %v1588_v52  ;;  %v2261_v48 = vrot.slane %v1141_v25, %v821_v43  ;;  %v1235_v52 = vcombine.low %v2259_v47, %v2263_v49  ;;  %v1348_v25 = vcombine.high %v2255_v45, %v2255_v45  ;;  %p1781_p3 = por %p1780_p2, %p1779_p1 }
 0x115   :  { %1019 = vmatprep.subr.bf16.mxu0 %v1579_v21  ;;  %1060 = vmatprep.subr.bf16.mxu1 %v1581_v22  ;;  %v1273_v21 = vcombine.high %v1271_v5, %v1271_v5  ;;  %v1302_v22 = vsel %vm1192_vm2, %v1271_v5, 0.0 }
 0x116   :  { %1037 = vmatprep.mubr.bf16.mxu0 %v1881_v51  ;;  %1078 = vmatprep.mubr.bf16.mxu1 %v1881_v51  ;;  %v797_v51 = vld [vmem:[%s2364_s5] sm:$0xff]  ;;  %v1234_v34 = vcombine.low %v2257_v46, %v2261_v48  ;;  %v1249_v57 = vrot.slane %v1235_v52, %v2073_v42  ;;  %v1303_v37 = vadd.f32 %v1302_v22, %v1301_v18  ;;  %p1782_p4 = pnand %p1781_p3, %p1775_p0 }
 0x117   :  { %v802_v54 = vrot.slane %v797_v51, %v801_v26  ;;  %v810_v55 = vrot.slane %v797_v51, %v809_v27  ;;  %v806_v59 = vrot.slane %v797_v51, %v805_v28  ;;  %v814_v60 = vrot.slane %v797_v51, %v813_v29 }
 0x118   :  { %1020 = vmatpush1.bf16.msra.mxu0 %v1578_v23  ;;  %1061 = vmatpush1.bf16.msra.mxu1 %v1580_v24  ;;  %v1242_v56 = vrot.slane %v1234_v34, %v2073_v42  ;;  %v818_v12 = vrot.slane %v797_v51, %v817_v40  ;;  %v826_v13 = vrot.slane %v797_v51, %v825_v41  ;;  %v1304_v40 = vsel %vm1192_vm2, %v1273_v21, 0.0 }
 0x119   :  { %v822_v19 = vrot.slane %v797_v51, %v821_v43  ;;  %v1305_v53 = vadd.f32 %v1304_v40, %v1303_v37 }
 0x11a   :  { %v1250_v4 = vcombine.low %v1242_v56, %v1249_v57 }
 0x11b   :  { %1592 = vmatmul.mubr.msk.bf16.vlgmr.msra.gmra.mxu0 %vm919_vm1, %v780_v20  ;;  %1593 = vmatmul.mubr.msk.bf16.vlgmr.msra.gmra.mxu1 %vm919_vm1, %v780_v20  ;;  %v830_v20 = vrot.slane %v797_v51, %v829_v44  ;;  %v1362_v44 = vrot.slane %v1348_v25, %v2073_v42  ;;  %v1372_v51 = vrot.slane %v45_v14, %v2073_v42 }
 0x11c   :  { %v1254_v17 = vmul.f32 %v1250_v4, %v45_v14 }
 0x11d   :  { %v1364_v58 = vcombine.high %v1362_v44, %v1362_v44 }
 0x11e   :  { %v1281_v36 = vrot.slane %v1254_v17, %v2073_v42  ;;  %v1274_v52 = vcombine.high %v1254_v17, %v1254_v17 }
 0x120   :  { %v1306_v56 = vsel %vm1192_vm2, %v1281_v36, 0.0 }
 0x121   :  { %v1307_v4 = vadd.f32 %v1306_v56, %v1305_v53 }
 0x1d3   :  { %v957_v62 = vpop.f32.mrf.mxu0  ;;  %v998_v63 = vpop.f32.mrf.mxu1 }
 0x1d4   :  { %v958_v0 = vadd.f32 %v957_v62, %v802_v54  ;;  %v999_v1 = vadd.f32 %v998_v63, %v810_v55  ;;  %v1363_v54 = vcombine.high %v1355_v35, %v1355_v35  ;;  %v1289_v55 = vcombine.high %v1281_v36, %v1281_v36 }
 0x1d5   :  { %v959_v2 = vpop.f32.mrf.mxu0  ;;  %v1000_v3 = vpop.f32.mrf.mxu1  ;;  %v1380_v62 = vcombine.high %v1372_v51, %v1372_v51 }
 0x1d6   :  { %1758 = vtanh.f32 %v958_v0  ;;  %v960_v7 = vadd.f32 %v959_v2, %v806_v59  ;;  %v1001_v8 = vadd.f32 %v1000_v3, %v814_v60  ;;  %v1379_v59 = vrot.slane %v1365_v50, %v2073_v42 }
 0x1d7   :  { %1760 = vtanh.f32 %v999_v1  ;;  %v961_v10 = vpop.f32.mrf.mxu0  ;;  %v1002_v11 = vpop.f32.mrf.mxu1  ;;  %v2296_v3 = vrot.slane %v1274_v52, %v2073_v42  ;;  %v1308_v9 = vsel %vm1192_vm2, %v1289_v55, 0.0 }
 0x1d8   :  { %1762 = vtanh.f32 %v960_v7  ;;  %v1309_v18 = vadd.f32 %v1308_v9, %v1307_v4 }
 0x1d9   :  { %1764 = vtanh.f32 %v1001_v8  ;;  %v962_v15 = vpop.f32.mrf.mxu0  ;;  %v1003_v16 = vpop.f32.mrf.mxu1  ;;  %v1290_v53 = vcombine.high %v2296_v3, %v2296_v3 }
 0x1db   :  { %v1039_v23 = vpop.f32.mrf.mxu0  ;;  %v1080_v24 = vpop.f32.mrf.mxu1 }
 0x1dc   :  { %v1040_v26 = vadd.f32 %v1039_v23, %v818_v12  ;;  %v1081_v27 = vadd.f32 %v1080_v24, %v826_v13 }
 0x1dd   :  { %v1041_v28 = vpop.f32.mrf.mxu0  ;;  %v1082_v29 = vpop.f32.mrf.mxu1 }
 0x1de   :  { %1766 = vtanh.f32 %v1040_v26  ;;  %v1042_v38 = vadd.f32 %v1041_v28, %v822_v19  ;;  %v1083_v39 = vadd.f32 %v1082_v29, %v830_v20 }
 0x1df   :  { %1768 = vtanh.f32 %v1081_v27  ;;  %v1043_v41 = vpop.f32.mrf.mxu0  ;;  %v1084_v43 = vpop.f32.mrf.mxu1 }
 0x1e0   :  { %1770 = vtanh.f32 %v1042_v38 }
 0x1e1   :  { %1772 = vtanh.f32 %v1083_v39  ;;  %v1044_v34 = vpop.f32.mrf.mxu0  ;;  %v1085_v45 = vpop.f32.mrf.mxu1 }
 0x1e3   :  { %v1759_v57 = vpop.eup %1758 }
 0x1e4   :  { %v1761_v60 = vpop.eup %1760  ;;  %v1184_v61 = vmul.f32 %v1759_v57, %v2234_v30  ;;  %v1390_v63 = vsub.f32 %v1759_v57, %v1355_v35  ;;  %v1381_v30 = vcombine.high %v1379_v59, %v1379_v59 }
 0x1e5   :  { %v1763_v0 = vpop.eup %1762  ;;  %v1186_v1 = vmul.f32 %v1761_v60, %v2236_v31  ;;  %v1392_v2 = vsub.f32 %v1761_v60, %v1362_v44 }
 0x1e6   :  { %v1765_v5 = vpop.eup %1764  ;;  %v1185_v6 = vmul.f32 %v1763_v0, %v2238_v32  ;;  %v1391_v7 = vsub.f32 %v1763_v0, %v1363_v54  ;;  %v1398_v8 = vand.u32 2147483647, %v1390_v63  ;;  %v1193_v13 = vsel %vm1192_vm2, %v1184_v61, 0.0 }
 0x1e7   :  { %v1187_v10 = vmul.f32 %v1765_v5, %v2240_v33  ;;  %v1393_v11 = vsub.f32 %v1765_v5, %v1364_v58  ;;  %v1400_v12 = vand.u32 2147483647, %v1392_v2  ;;  %v1103_v15 = vcombine.low %v1759_v57, %v1763_v0 }
 0x1e8   :  { %v1194_v31 = vsel %vm1192_vm2, %v1185_v6, 0.0  ;;  %v1399_v14 = vand.u32 2147483647, %v1391_v7  ;;  %v1196_v16 = vsel %vm1192_vm2, %v1186_v1, 0.0  ;;  %v1310_v32 = vsel %vm1192_vm2, %v2296_v3, 0.0 }
 0x1e9   :  { %v1195_v17 = vadd.f32 %v1194_v31, %v1193_v13  ;;  %v1198_v19 = vsel %vm1192_vm2, %v1187_v10, 0.0  ;;  %v1406_v33 = vsel %vm1192_vm2, %v1398_v8, 0.0  ;;  %v1104_v21 = vcombine.low %v1761_v60, %v1765_v5 }
 0x1ea   :  { %v1407_v20 = vsel %vm1192_vm2, %v1399_v14, 0.0  ;;  %v1401_v24 = vand.u32 2147483647, %v1393_v11  ;;  %v1409_v26 = vsel %vm1192_vm2, %v1400_v12, 0.0  ;;  %v1111_v35 = vrot.slane %v1103_v15, %v2073_v42 }
 0x1eb   :  { %v1767_v22 = vpop.eup %1766  ;;  %v1197_v23 = vadd.f32 %v1196_v16, %v1195_v17  ;;  %v1408_v25 = vadd.f32 %v1407_v20, %v1406_v33  ;;  %v1118_v36 = vrot.slane %v1104_v21, %v2073_v42  ;;  %v1312_v5 = vsel %vm1192_vm2, %v1290_v53, 0.0 }
 0x1ec   :  { %v1769_v27 = vpop.eup %1768  ;;  %v1188_v28 = vmul.f32 %v1767_v22, %v2257_v46  ;;  %v1394_v29 = vsub.f32 %v1767_v22, %v1372_v51  ;;  %v1411_v51 = vsel %vm1192_vm2, %v1401_v24, 0.0 }
 0x1ed   :  { %v1771_v37 = vpop.eup %1770  ;;  %v1190_v38 = vmul.f32 %v1769_v27, %v2259_v47  ;;  %v1199_v39 = vadd.f32 %v1198_v19, %v1197_v23  ;;  %v1396_v40 = vsub.f32 %v1769_v27, %v1379_v59  ;;  %v1410_v41 = vadd.f32 %v1409_v26, %v1408_v25 }
 0x1ee   :  { %v1773_v43 = vpop.eup %1772  ;;  %v1189_v44 = vmul.f32 %v1771_v37, %v2261_v48  ;;  %v1200_v50 = vsel %vm1192_vm2, %v1188_v28, 0.0  ;;  %v1395_v34 = vsub.f32 %v1771_v37, %v1380_v62  ;;  %v1402_v45 = vand.u32 2147483647, %v1394_v29 }
 0x1ef   :  { %v1201_v52 = vadd.f32 %v1200_v50, %v1199_v39  ;;  %v1397_v46 = vsub.f32 %v1773_v43, %v1381_v30  ;;  %v1191_v54 = vmul.f32 %v1773_v43, %v2263_v49  ;;  %v1412_v56 = vadd.f32 %v1411_v51, %v1410_v41 }
 0x1f0   :  { %v1202_v47 = vsel %vm1192_vm2, %v1189_v44, 0.0  ;;  %v1403_v55 = vand.u32 2147483647, %v1395_v34  ;;  %v1404_v58 = vand.u32 2147483647, %v1396_v40  ;;  %v1413_v48 = vsel %vm1192_vm2, %v1402_v45, 0.0 }
 0x1f1   :  { %v1203_v57 = vadd.f32 %v1202_v47, %v1201_v52  ;;  %v1311_v59 = vadd.f32 %v1310_v32, %v1309_v18  ;;  %v1204_v60 = vsel %vm1192_vm2, %v1190_v38, 0.0  ;;  %v1414_v61 = vadd.f32 %v1413_v48, %v1412_v56 }
 0x1f2   :  { %v1415_v62 = vsel %vm1192_vm2, %v1403_v55, 0.0  ;;  %v1119_v63 = vcombine.low %v1111_v35, %v1118_v36  ;;  %v1405_v1 = vand.u32 2147483647, %v1397_v46  ;;  %v1120_v2 = vcombine.low %v1767_v22, %v1771_v37 }
 0x1f3   :  { %v1205_v0 = vadd.f32 %v1204_v60, %v1203_v57  ;;  %v1121_v3 = vcombine.low %v1769_v27, %v1773_v43  ;;  %v1206_v49 = vsel %vm1192_vm2, %v1191_v54, 0.0  ;;  %v1416_v4 = vadd.f32 %v1415_v62, %v1414_v61 }
 0x1f4   :  { %1139 = vst [vmem:[#allocation5] sm:$0xff] %v1119_v63  ;;  %v1417_v7 = vsel %vm1192_vm2, %v1404_v58, 0.0  ;;  %v1128_v8 = vrot.slane %v1120_v2, %v2073_v42  ;;  %v1419_v30 = vsel %vm1192_vm2, %v1405_v1, 0.0  ;;  %v1313_v11 = vadd.f32 %v1312_v5, %v1311_v59 }
 0x1f5   :  { %v1207_v6 = vadd.f32 %v1206_v49, %v1205_v0  ;;  %v1135_v9 = vrot.slane %v1121_v3, %v2073_v42  ;;  %v1418_v10 = vadd.f32 %v1417_v7, %v1416_v4 }
 0x1f7   :  { %1208 = vadd.xlane.f32.xlu0 %v1207_v6  ;;  %v1136_v12 = vcombine.low %v1128_v8, %v1135_v9  ;;  %v1420_v13 = vadd.f32 %v1419_v30, %v1418_v10 }
 0x1f9   :  { %1140 = vst [vmem:[#allocation5 + $0x8] sm:$0xff] %v1136_v12  ;;  %1421 = vadd.xlane.f32.xlu1 %v1420_v13 }
 0x1fb   :  { %1314 = vadd.xlane.f32.xlu0 %v1313_v11 }
 0x1fc   :  { %1785 = shalt.err (!%p1782_p4)
}
 0x1fd   :  { %1452 = dma.vmem_to_hbm [thread:$0]  %s1450_s26, 256, %s2368_s9, [#allocation6]  }
 0x1fe   :  { %s1883_s2 = smov [#allocation3]  }
 0x1ff   :  { %s1439_s30 = sshll.u32 %s1883_s2, 4  ;;  %s1440_s30 = int_to_ptr.vmem [resolvable:$true] %s1439_s30 }
 0x200   :  { %s1794_s15 = scalar_lea.vmem %s1440_s30, 32  ;;  %p1799_p6 = scmp.lt.s32.totalorder %s1440_s30, %s1440_s30 }
 0x201   :  { %p1795_p5 = scmp.ne.s32.totalorder %s1440_s30, %s1794_s15  ;;  %p1800_p7 = scmp.lt.s32.totalorder %s1794_s15, %s1794_s15 }
 0x203   :  { %p1801_p8 = por %p1800_p7, %p1799_p6 }
 0x205   :  { %p1802_p9 = pnand %p1801_p8, %p1795_p5 }
 0x207   :  { %1805 = shalt.err (!%p1802_p9)
}
 0x208   :  { %1442 = dma.vmem_to_hbm [thread:$0]  %s1440_s30, 32, %s2367_s8, [#allocation4]   ;;  %v1594_v42 = vld [vmem:[#allocation2] ss:$0 sm:$0xff]  ;;  %vm1317_vm3 = vcmask 1024   ;;  %vm1330_vm4 = vcmask 0  }
 0x280   :  { %v1209_v31 = vpop.xlane.xlu0 %1208 }
 0x281   :  { %v1216_v14 = vadd.f32 %v1594_v42, %v1209_v31 }
 0x282   :  { %v1422_v16 = vpop.xlane.xlu1 %1421 }
 0x283   :  { %1318 = vst.msk [vmem:[%s2369_s10] sm:$0x3] %vm1317_vm3, %v1216_v14  ;;  %v1320_v15 = vsel %vm1317_vm3, %v1216_v14, 0.0  ;;  %v1423_v18 = vsel %vm1192_vm2, %v1422_v16, 0.0  ;;  %v1334_v19 = vadd.f32 1.0, %v1216_v14  ;;  %s1884_s10 = smov [#allocation7]  }
 0x284   :  { %v1321_v17 = vrot.slane %v1320_v15, 4  ;;  %v1315_v32 = vpop.xlane.xlu0 %1314  ;;  %v1424_v33 = vrot.slane %v1423_v18, 4  ;;  %s1463_s19 = sshll.u32 %s1884_s10, 4  ;;  %s1464_s19 = int_to_ptr.vmem [resolvable:$true] %s1463_s19 }
 0x285   :  { %v1316_v20 = vadd.f32 %v1594_v42, %v1315_v32  ;;  %v1335_v25 = vmax.f32 %v1334_v19, 0.0  ;;  %s1818_s0 = scalar_lea.vmem %s1464_s19, 32  ;;  %p1819_p11 = scmp.lt.s32.totalorder %s1464_s19, %s1464_s19 }
 0x286   :  { %v1322_v21 = vadd.f32 %v1321_v17, %v1320_v15  ;;  %v1425_v22 = vadd.f32 %v1424_v33, %v1423_v18 }
 0x287   :  { %1319 = vst.msk [vmem:[%s2370_s11] sm:$0x3] %vm1317_vm3, %v1316_v20  ;;  %v1332_v23 = vsub.f32 1.0, %v1316_v20  ;;  %s1814_s11 = scalar_lea.vmem %s1464_s19, 16 }
 0x288   :  { %v1323_v24 = vrot.slane %v1322_v21, 2  ;;  %v1426_v26 = vrot.slane %v1425_v22, 2  ;;  %p1815_p10 = scmp.ne.s32.totalorder %s1464_s19, %s1814_s11  ;;  %p1820_p12 = scmp.lt.s32.totalorder %s1818_s0, %s1814_s11 }
 0x289   :  { %v1333_v27 = vmax.f32 %v1332_v23, 0.0 }
 0x28a   :  { %v1324_v28 = vadd.f32 %v1323_v24, %v1322_v21  ;;  %v1427_v29 = vadd.f32 %v1426_v26, %v1425_v22  ;;  %p1821_p13 = por %p1820_p12, %p1819_p11 }
 0x28b   :  { %v1336_v35 = vadd.f32 %v1335_v25, %v1333_v27 }
 0x28c   :  { %v1325_v36 = vrot.slane %v1324_v28, 1  ;;  %v1428_v37 = vrot.slane %v1427_v29, 1  ;;  %p1822_p0 = pnand %p1821_p13, %p1815_p10 }
 0x28d   :  { %v1337_v38 = vsel %vm1317_vm3, %v1336_v35, 0.0 }
 0x28e   :  { %v1338_v39 = vrot.slane %v1337_v38, 4  ;;  %v1326_v40 = vadd.f32 %v1325_v36, %v1324_v28  ;;  %v1429_v41 = vadd.f32 %v1428_v37, %v1427_v29 }
 0x290   :  { %v1339_v43 = vadd.f32 %v1338_v39, %v1337_v38  ;;  %v1327_v44 = vsub.f32 0.0, %v1326_v40  ;;  %v1431_v50 = vmul.f32 0.00048828125, %v1429_v41 }
 0x292   :  { %v1340_v34 = vrot.slane %v1339_v43, 2  ;;  %v1329_v45 = vmul.f32 0.5, %v1327_v44  ;;  %1432 = vst.msk [vmem:[#allocation10] sm:$0x1] %vm1330_vm4, %v1431_v50 }
 0x294   :  { %v1341_v52 = vadd.f32 %v1340_v34, %v1339_v43  ;;  %1331 = vst.msk [vmem:[#allocation7] sm:$0x1] %vm1330_vm4, %v1329_v45 }
 0x295   :  { %1825 = shalt.err (!%p1822_p0)
}
 0x296   :  { %1466 = dma.vmem_to_hbm [thread:$0]  %s1464_s19, 16, %s2371_s12, [#allocation6]   ;;  %v1342_v46 = vrot.slane %v1341_v52, 1 }
 0x297   :  { %s1885_s4 = smov [#allocation8]   ;;  %s1886_s6 = smov [#allocation10]  }
 0x298   :  { %s1473_s22 = sshll.u32 %s1885_s4, 4  ;;  %v1343_v51 = vadd.f32 %v1342_v46, %v1341_v52  ;;  %s1483_s7 = sshll.u32 %s1886_s6, 4  ;;  %s1474_s22 = int_to_ptr.vmem [resolvable:$true] %s1473_s22  ;;  %s1484_s7 = int_to_ptr.vmem [resolvable:$true] %s1483_s7 }
 0x299   :  { %s1834_s23 = scalar_lea.vmem %s1474_s22, 16  ;;  %s1838_s24 = scalar_lea.vmem %s1474_s22, 32 }
 0x29a   :  { %v1344_v53 = vmul.f32 0.5, %v1343_v51  ;;  %p1835_p1 = scmp.ne.s32.totalorder %s1474_s22, %s1834_s23  ;;  %p1839_p2 = scmp.lt.s32.totalorder %s1474_s22, %s1474_s22 }
 0x29b   :  { %p1840_p3 = scmp.lt.s32.totalorder %s1838_s24, %s1834_s23 }
 0x29c   :  { %1345 = vst.msk [vmem:[#allocation8] sm:$0x1] %vm1330_vm4, %v1344_v53 }
 0x29d   :  { %p1841_p4 = por %p1840_p3, %p1839_p2 }
 0x29f   :  { %p1842_p5 = pnand %p1841_p4, %p1835_p1 }
 0x2a1   :  { %1845 = shalt.err (!%p1842_p5)
}
 0x2a2   :  { %1476 = dma.vmem_to_hbm [thread:$0]  %s1474_s22, 16, %s2372_s13, [#allocation9]  }
 0x2a3   :  { %s1854_s25 = scalar_lea.vmem %s1484_s7, 16  ;;  %s1858_s1 = scalar_lea.vmem %s1484_s7, 32 }
 0x2a4   :  { %p1855_p6 = scmp.ne.s32.totalorder %s1484_s7, %s1854_s25  ;;  %p1859_p7 = scmp.lt.s32.totalorder %s1484_s7, %s1484_s7 }
 0x2a5   :  { %p1860_p8 = scmp.lt.s32.totalorder %s1858_s1, %s1854_s25 }
 0x2a7   :  { %p1861_p9 = por %p1860_p8, %p1859_p7 }
 0x2a9   :  { %p1862_p10 = pnand %p1861_p9, %p1855_p6 }
 0x2ab   :  { %1865 = shalt.err (!%p1862_p10)
}
 0x2ac   :  { %1486 = dma.vmem_to_hbm [thread:$0]  %s1484_s7, 16, %s2373_s14, [#allocation9]  }
 0x2ad   :  { %1874 = dma.done.wait [#allocation4], 32  }
 0x2ae   :  { %1875 = vsyncadd [#allocation4], 4294967264 }
 0x2af   :  { %1876 = dma.done.wait [#allocation6], 272  }
 0x2b0   :  { %1877 = vsyncadd [#allocation6], 4294967024 }
 0x2b1   :  { %1878 = dma.done.wait [#allocation9], 32  }
 0x2b2   :  { %1879 = vsyncadd [#allocation9], 4294967264 }
 0x2b3   :  { %1506 = vsyncpa [#allocation4], 1 }
 0x2b4   :  { %1507 = vsyncpa [#allocation6], 1 }
 0x2b5   :  { %1508 = vsyncpa [#allocation9], 1 }

</bundles_post_ra>
